<compile_context>
chip_gen: v7x
topology: tpu7x:2x2x1
jax: 0.10.0
libtpu: 0.0.40
codegen_flags: <defaults>
</compile_context>

<pallas_src>
import functools

import jax
import jax.numpy as jnp
from jax.experimental import pallas as pl
from jax.experimental.pallas import tpu as pltpu


def _sdpa_kernel(*refs, inv_temperature, has_mask):
    if has_mask:
        q_ref, k_ref, v_ref, bias_ref, out_ref, attn_ref = refs
    else:
        q_ref, k_ref, v_ref, out_ref, attn_ref = refs
        bias_ref = None

    # Fold 1/temperature into q: a (TQ,Dk) multiply instead of a (TQ,Lk) one,
    # and it matches the PyTorch reference (q / temperature, in q's dtype).
    q = q_ref[...] * jnp.asarray(inv_temperature, dtype=q_ref.dtype)  # (TQ, Dk)
    k = k_ref[...]                                                    # (Lk, Dk)
    v = v_ref[...]                                                    # (Lk, Dv)

    # scores = (q/T) @ k^T on the MXU (native-dtype operands, f32 accumulation).
    scores = jax.lax.dot_general(
        q, k, (((1,), (1,)), ((), ())),
        preferred_element_type=jnp.float32)            # (TQ, Lk) f32

    if has_mask:
        # Additive bias: 0 where kept, -1e9 where masked; broadcasts over any
        # batch / head / query dims the caller left at size 1.
        scores = scores + bias_ref[...]

    # Numerically-stable softmax in f32; divide goes to the EUP.
    m = jnp.max(scores, axis=-1, keepdims=True)
    e = jnp.exp(scores - m)
    denom = jnp.sum(e, axis=-1, keepdims=True)
    attn = e * pl.reciprocal(denom, approx=True)       # (TQ, Lk) f32

    # Cast attn to the MXU / writeback dtype ONCE and reuse it.
    attn_lo = attn.astype(v.dtype)
    out = jnp.dot(attn_lo, v,
                  preferred_element_type=jnp.float32)  # (TQ, Dv) f32

    if attn_ref.dtype == attn_lo.dtype:
        attn_ref[...] = attn_lo
    else:
        attn_ref[...] = attn.astype(attn_ref.dtype)
    out_ref[...] = out.astype(out_ref.dtype)


def _device_kind():
    try:
        return jax.devices()[0].device_kind.lower()
    except Exception:
        return ""


def _choose_tq(Lq, device_kind):
    # v6e: 256-row tiles fill the 2x256^2 MXU M dim and halve per-step overhead
    # (128 MiB VMEM absorbs the 2x scores/attn tiles).  v7x (64 MiB VMEM) and
    # v5e (128-wide MXU) stay at 128.
    prefer = 256 if "v6" in device_kind else 128
    for t in (prefer, 128):
        if Lq >= t and Lq % t == 0:
            return t
    return Lq


def _vmem_capacity_bytes(device_kind):
    try:
        cap = getattr(pltpu.get_tpu_info(), "vmem_capacity_bytes", None)
        if cap:
            return int(cap)
    except Exception:
        pass
    # Fallback keyed on generation: 128 MiB on v4/v5/v6, 64 MiB on v7x/unknown.
    if any(g in device_kind for g in ("v4", "v5", "v6")):
        return 128 * 1024 * 1024
    return 64 * 1024 * 1024


def scaled_dot_product_attention(q, k, v, mask=None, *, temperature):
    """Pallas TPU implementation of ScaledDotProductAttention.forward (eval).

    q: (B, H, Lq, Dk), k: (B, H, Lk, Dk), v: (B, H, Lk, Dv)
    mask: optional, broadcastable to (B, H, Lq, Lk); 0 entries are masked.
    Returns (output, attn): output (B, H, Lq, Dv), attn (B, H, Lq, Lk),
    both in the input dtype.
    """
    B, H, Lq, Dk = q.shape
    Lk = k.shape[2]
    Dv = v.shape[3]

    device_kind = _device_kind()
    TQ = _choose_tq(Lq, device_kind)
    grid = (B, H, Lq // TQ)

    q_spec = pl.BlockSpec((None, None, TQ, Dk), lambda b, h, i: (b, h, i, 0))
    k_spec = pl.BlockSpec((None, None, Lk, Dk), lambda b, h, i: (b, h, 0, 0))
    v_spec = pl.BlockSpec((None, None, Lk, Dv), lambda b, h, i: (b, h, 0, 0))
    out_specs = (
        pl.BlockSpec((None, None, TQ, Dv), lambda b, h, i: (b, h, i, 0)),
        pl.BlockSpec((None, None, TQ, Lk), lambda b, h, i: (b, h, i, 0)),
    )
    out_shapes = (
        jax.ShapeDtypeStruct((B, H, Lq, Dv), q.dtype),
        jax.ShapeDtypeStruct((B, H, Lq, Lk), q.dtype),
    )

    itemsize = jnp.dtype(q.dtype).itemsize
    # double-buffered input tiles + double-buffered output tiles (native dtype)
    per_step = (2 * (TQ * Dk + Lk * Dk + Lk * Dv) * itemsize
                + 2 * (TQ * Dv + TQ * Lk) * itemsize)
    # f32 softmax intermediates (scores / e / attn) resident during compute
    per_step += 3 * TQ * Lk * 4

    in_specs = [q_spec, k_spec, v_spec]
    operands = [q, k, v]
    has_mask = mask is not None

    if has_mask:
        m = mask
        while m.ndim < 4:
            m = m[None]
        Bm, Hm, Lqm, Lkm = m.shape
        if (Bm not in (1, B) or Hm not in (1, H)
                or Lqm not in (1, Lq) or Lkm not in (1, Lk)):
            raise ValueError(
                f"mask shape {mask.shape} not broadcastable to {(B, H, Lq, Lk)}")
        # Additive f32 bias, broadcast dims NOT materialized in HBM.
        bias = jnp.where(m == 0, jnp.float32(-1e9), jnp.float32(0.0))
        tq_m = TQ if Lqm == Lq else 1

        def bias_index_map(b, h, i):
            return (b if Bm == B else 0,
                    h if Hm == H else 0,
                    i if Lqm == Lq else 0,
                    0)

        in_specs.append(pl.BlockSpec((None, None, tq_m, Lkm), bias_index_map))
        operands.append(bias)
        per_step += 2 * tq_m * Lkm * 4  # double-buffered f32 bias tile

    # per-step footprint + headroom, clamped to the chip's VMEM capacity.
    vmem_cap = _vmem_capacity_bytes(device_kind)
    vmem_limit = int(min(max(per_step + (16 << 20), 32 << 20),
                         int(vmem_cap * 0.9)))

    kernel = functools.partial(_sdpa_kernel,
                               inv_temperature=1.0 / float(temperature),
                               has_mask=has_mask)

    out, attn = pl.pallas_call(
        kernel,
        out_shape=out_shapes,
        grid=grid,
        in_specs=in_specs,
        out_specs=out_specs,
        compiler_params=pltpu.CompilerParams(
            dimension_semantics=("parallel", "parallel", "parallel"),
            vmem_limit_bytes=vmem_limit),
    )(*operands)
    return out, attn


def _reference(q, k, v, mask, temperature):
    # Pure-JAX reference mirroring the PyTorch forward (eval mode), in f32.
    q32, k32, v32 = (x.astype(jnp.float32) for x in (q, k, v))
    attn = jnp.einsum("bhqd,bhkd->bhqk", q32 / temperature, k32)
    if mask is not None:
        attn = jnp.where(mask == 0, -1e9, attn)
    attn = jax.nn.softmax(attn, axis=-1)
    out = jnp.einsum("bhqk,bhkd->bhqd", attn, v32)
    return out, attn


if __name__ == "__main__":
    B, H, Lq, Lk, Dk, Dv = 2, 2, 8, 8, 16, 16
    temperature = float(Dk) ** 0.5

    key = jax.random.PRNGKey(0)
    kq, kk, kv, km = jax.random.split(key, 4)
    q = jax.random.normal(kq, (B, H, Lq, Dk), dtype=jnp.float32)
    k = jax.random.normal(kk, (B, H, Lk, Dk), dtype=jnp.float32)
    v = jax.random.normal(kv, (B, H, Lk, Dv), dtype=jnp.float32)
    # head-broadcast random mask (kept at H=1 in HBM), 0 => masked
    mask = (jax.random.uniform(km, (B, 1, Lq, Lk)) > 0.2).astype(jnp.int32)

    # --- f32, masked ---
    out, attn = scaled_dot_product_attention(q, k, v, mask,
                                             temperature=temperature)
    jax.block_until_ready((out, attn))
    ref_out, ref_attn = _reference(q, k, v, mask, temperature)
    # tolerance accounts for the approximate (EUP) reciprocal in the softmax
    assert jnp.allclose(out, ref_out, atol=2e-3, rtol=2e-3)
    assert jnp.allclose(attn, ref_attn, atol=2e-3, rtol=2e-3)

    # --- f32, no mask ---
    out2, attn2 = scaled_dot_product_attention(q, k, v, None,
                                               temperature=temperature)
    jax.block_until_ready((out2, attn2))
    ref_out2, ref_attn2 = _reference(q, k, v, None, temperature)
    assert jnp.allclose(out2, ref_out2, atol=2e-3, rtol=2e-3)
    assert jnp.allclose(attn2, ref_attn2, atol=2e-3, rtol=2e-3)

    # --- bf16 path (native-dtype MXU operands, single bf16 attn cast) ---
    qb, kb, vb = (x.astype(jnp.bfloat16) for x in (q, k, v))
    out3, attn3 = scaled_dot_product_attention(qb, kb, vb, mask,
                                               temperature=temperature)
    jax.block_until_ready((out3, attn3))
    ref_out3, ref_attn3 = _reference(qb, kb, vb, mask, temperature)
    assert out3.dtype == jnp.bfloat16 and attn3.dtype == jnp.bfloat16
    assert jnp.allclose(out3.astype(jnp.float32), ref_out3, atol=5e-2, rtol=5e-2)
    assert jnp.allclose(attn3.astype(jnp.float32), ref_attn3, atol=5e-2, rtol=5e-2)

    print("KERNEL_OK")
</pallas_src>

<mosaic_0001>
module attributes {stable_mosaic.version = 11 : i64} {
  func.func @_sdpa_kernel(%arg0: i32, %arg1: i32, %arg2: i32, %arg3: memref<1x1x8x16xf32, #tpu.memory_space<vmem>>, %arg4: memref<1x1x8x16xf32, #tpu.memory_space<vmem>>, %arg5: memref<1x1x8x16xf32, #tpu.memory_space<vmem>>, %arg6: memref<1x1x8x8xf32, #tpu.memory_space<vmem>>, %arg7: memref<1x1x8x16xf32, #tpu.memory_space<vmem>>, %arg8: memref<1x1x8x8xf32, #tpu.memory_space<vmem>>) attributes {dimension_semantics = [#tpu.dimension_semantics<parallel>, #tpu.dimension_semantics<parallel>, #tpu.dimension_semantics<parallel>], iteration_bounds = array<i64: 2, 2, 1>, scalar_prefetch = 0 : i64, scratch_operands = 0 : i64, tpu.core_type = #tpu.core_type<tc>, window_params = [{transform_indices = @transform_0, window_bounds = array<i64: 1, 1, 8, 16>}, {transform_indices = @transform_1, window_bounds = array<i64: 1, 1, 8, 16>}, {transform_indices = @transform_2, window_bounds = array<i64: 1, 1, 8, 16>}, {transform_indices = @transform_3, window_bounds = array<i64: 1, 1, 8, 8>}, {transform_indices = @transform_4, window_bounds = array<i64: 1, 1, 8, 16>}, {transform_indices = @transform_5, window_bounds = array<i64: 1, 1, 8, 8>}]} {
    %c0 = arith.constant 0 : index
    %c0_0 = arith.constant 0 : index
    %c0_1 = arith.constant 0 : index
    %c0_2 = arith.constant 0 : index
    %0 = vector.load %arg3[%c0, %c0_0, %c0_1, %c0_2] : memref<1x1x8x16xf32, #tpu.memory_space<vmem>>, vector<1x1x8x16xf32>
    %1 = vector.shape_cast %0 : vector<1x1x8x16xf32> to vector<8x16xf32>
    %cst = arith.constant 2.500000e-01 : f32
    %2 = vector.broadcast %cst : f32 to vector<8x16xf32>
    %3 = arith.mulf %1, %2 : vector<8x16xf32>
    %c0_3 = arith.constant 0 : index
    %c0_4 = arith.constant 0 : index
    %c0_5 = arith.constant 0 : index
    %c0_6 = arith.constant 0 : index
    %4 = vector.load %arg4[%c0_3, %c0_4, %c0_5, %c0_6] : memref<1x1x8x16xf32, #tpu.memory_space<vmem>>, vector<1x1x8x16xf32>
    %5 = vector.shape_cast %4 : vector<1x1x8x16xf32> to vector<8x16xf32>
    %c0_7 = arith.constant 0 : index
    %c0_8 = arith.constant 0 : index
    %c0_9 = arith.constant 0 : index
    %c0_10 = arith.constant 0 : index
    %6 = vector.load %arg5[%c0_7, %c0_8, %c0_9, %c0_10] : memref<1x1x8x16xf32, #tpu.memory_space<vmem>>, vector<1x1x8x16xf32>
    %7 = vector.shape_cast %6 : vector<1x1x8x16xf32> to vector<8x16xf32>
    %cst_11 = arith.constant dense<0.000000e+00> : vector<8x8xf32>
    %8 = tpu.matmul %3, %5, %cst_11 {dimension_numbers = #tpu.dot_dimension_numbers<[1], [1], [0], [0], [0, 0, 1, 0], [], []>} : vector<8x16xf32>, vector<8x16xf32>, vector<8x8xf32> -> vector<8x8xf32>
    %c0_12 = arith.constant 0 : index
    %c0_13 = arith.constant 0 : index
    %c0_14 = arith.constant 0 : index
    %c0_15 = arith.constant 0 : index
    %9 = vector.load %arg6[%c0_12, %c0_13, %c0_14, %c0_15] : memref<1x1x8x8xf32, #tpu.memory_space<vmem>>, vector<1x1x8x8xf32>
    %10 = vector.shape_cast %9 : vector<1x1x8x8xf32> to vector<8x8xf32>
    %11 = arith.addf %8, %10 : vector<8x8xf32>
    %cst_16 = arith.constant dense<0xFF800000> : vector<8xf32>
    %12 = vector.multi_reduction <maximumf>, %11, %cst_16 [1] : vector<8x8xf32> to vector<8xf32>
    %13 = vector.shape_cast %12 : vector<8xf32> to vector<8x1xf32>
    %14 = vector.broadcast %13 : vector<8x1xf32> to vector<8x8xf32>
    %15 = arith.subf %11, %14 : vector<8x8xf32>
    %16 = math.exp %15 : vector<8x8xf32>
    %cst_17 = arith.constant dense<0.000000e+00> : vector<8xf32>
    %17 = vector.multi_reduction <add>, %16, %cst_17 [1] : vector<8x8xf32> to vector<8xf32>
    %18 = vector.shape_cast %17 : vector<8xf32> to vector<8x1xf32>
    %19 = tpu.reciprocal %18 {approx = true} : vector<8x1xf32> -> vector<8x1xf32>
    %20 = vector.broadcast %19 : vector<8x1xf32> to vector<8x8xf32>
    %21 = arith.mulf %16, %20 : vector<8x8xf32>
    %cst_18 = arith.constant dense<0.000000e+00> : vector<8x16xf32>
    %22 = tpu.matmul %21, %7, %cst_18 {dimension_numbers = #tpu.dot_dimension_numbers<[1], [0], [0], [1], [0, 0, 1, 1], [], []>} : vector<8x8xf32>, vector<8x16xf32>, vector<8x16xf32> -> vector<8x16xf32>
    %c0_19 = arith.constant 0 : index
    %c0_20 = arith.constant 0 : index
    %c0_21 = arith.constant 0 : index
    %c0_22 = arith.constant 0 : index
    %23 = vector.load %arg8[%c0_19, %c0_20, %c0_21, %c0_22] : memref<1x1x8x8xf32, #tpu.memory_space<vmem>>, vector<1x1x8x8xf32>
    %24 = vector.shape_cast %23 : vector<1x1x8x8xf32> to vector<8x8xf32>
    %25 = vector.shape_cast %21 : vector<8x8xf32> to vector<1x1x8x8xf32>
    tpu.vector_store %arg8[%c0_19, %c0_20, %c0_21, %c0_22], %25 {strides = array<i32>} : memref<1x1x8x8xf32, #tpu.memory_space<vmem>>, vector<1x1x8x8xf32>,
    %c0_23 = arith.constant 0 : index
    %c0_24 = arith.constant 0 : index
    %c0_25 = arith.constant 0 : index
    %c0_26 = arith.constant 0 : index
    %26 = vector.load %arg7[%c0_23, %c0_24, %c0_25, %c0_26] : memref<1x1x8x16xf32, #tpu.memory_space<vmem>>, vector<1x1x8x16xf32>
    %27 = vector.shape_cast %26 : vector<1x1x8x16xf32> to vector<8x16xf32>
    %28 = vector.shape_cast %22 : vector<8x16xf32> to vector<1x1x8x16xf32>
    tpu.vector_store %arg7[%c0_23, %c0_24, %c0_25, %c0_26], %28 {strides = array<i32>} : memref<1x1x8x16xf32, #tpu.memory_space<vmem>>, vector<1x1x8x16xf32>,
    return
  }
  func.func @transform_0(%arg0: i32, %arg1: i32, %arg2: i32) -> (i32, i32, i32, i32) {
    %c0_i32 = arith.constant 0 : i32
    %c0_i32_0 = arith.constant 0 : i32
    return %arg0, %arg1, %arg2, %c0_i32 : i32, i32, i32, i32
  }
  func.func @transform_1(%arg0: i32, %arg1: i32, %arg2: i32) -> (i32, i32, i32, i32) {
    %c0_i32 = arith.constant 0 : i32
    %c0_i32_0 = arith.constant 0 : i32
    %c0_i32_1 = arith.constant 0 : i32
    return %arg0, %arg1, %c0_i32, %c0_i32_0 : i32, i32, i32, i32
  }
  func.func @transform_2(%arg0: i32, %arg1: i32, %arg2: i32) -> (i32, i32, i32, i32) {
    %c0_i32 = arith.constant 0 : i32
    %c0_i32_0 = arith.constant 0 : i32
    %c0_i32_1 = arith.constant 0 : i32
    return %arg0, %arg1, %c0_i32, %c0_i32_0 : i32, i32, i32, i32
  }
  func.func @transform_3(%arg0: i32, %arg1: i32, %arg2: i32) -> (i32, i32, i32, i32) {
    %c0_i32 = arith.constant 0 : i32
    %c0_i32_0 = arith.constant 0 : i32
    %c0_i32_1 = arith.constant 0 : i32
    return %arg0, %c0_i32, %arg2, %c0_i32_0 : i32, i32, i32, i32
  }
  func.func @transform_4(%arg0: i32, %arg1: i32, %arg2: i32) -> (i32, i32, i32, i32) {
    %c0_i32 = arith.constant 0 : i32
    %c0_i32_0 = arith.constant 0 : i32
    return %arg0, %arg1, %arg2, %c0_i32 : i32, i32, i32, i32
  }
  func.func @transform_5(%arg0: i32, %arg1: i32, %arg2: i32) -> (i32, i32, i32, i32) {
    %c0_i32 = arith.constant 0 : i32
    %c0_i32_0 = arith.constant 0 : i32
    return %arg0, %arg1, %arg2, %c0_i32 : i32, i32, i32, i32
  }
}

</mosaic_0001>

<bundles_post_ra>
// kernel: tpu_custom_call.1
= control target key start
LH: loop header
LB: loop body
LE: loop exit
PB: predicated region body
PF: predicated region fallthrough
CT: control target
= control target key end

     0   :  { %s1719_s0 = inlined_call_operand.hbm [shape: f32[2,2,8,16], index: 0, kind: input, shape index: {}]   ;;  %s1720_s1 = inlined_call_operand.hbm [shape: f32[2,2,8,16], index: 1, kind: input, shape index: {}]   ;;  %s1721_s2 = inlined_call_operand.hbm [shape: f32[2,2,8,16], index: 2, kind: input, shape index: {}]   ;;  %s1722_s3 = inlined_call_operand.hbm [shape: f32[2,1,8,8], index: 3, kind: input, shape index: {}]   ;;  %s1723_s4 = inlined_call_operand.hbm [shape: f32[2,2,8,16], index: 4, kind: output, shape index: {0}]   ;;  %s1724_s5 = inlined_call_operand.hbm [shape: f32[2,2,8,8], index: 5, kind: output, shape index: {1}]  }
   0x1   :  { %1743 = sst [smem:[#allocation27_spill]] %s1720_s1 }
   0x2   :  { %1744 = sst [smem:[#allocation28_spill]] %s1723_s4 }
   0x3   :  { %1745 = sst [smem:[#allocation29_spill]] %s1724_s5 }
   0x4   :  { %11 = vsyncpa [#allocation3], 0 }
   0x5   :  { %13 = vsyncpa [#allocation3 + $0x1], 0 }
   0x6   :  { %14 = vsyncpa [#allocation6], 0 }
   0x7   :  { %16 = vsyncpa [#allocation6 + $0x1], 0 }
   0x8   :  { %17 = vsyncpa [#allocation9], 0 }
   0x9   :  { %19 = vsyncpa [#allocation9 + $0x1], 0 }
   0xa   :  { %20 = vsyncpa [#allocation4], 0 }
   0xb   :  { %22 = vsyncpa [#allocation4 + $0x1], 0 }
   0xc   :  { %23 = vsyncpa [#allocation12], 0 }
   0xd   :  { %25 = vsyncpa [#allocation12 + $0x1], 0  ;;  %s1304_s18 = smov 0   ;;  %s1306_s19 = smov 0  }
   0xe   :  { %s1308_s20 = smov 0   ;;  %s1310_s21 = smov 0  }
   0xf   :  { %s1312_s22 = smov 0   ;;  %s1314_s23 = smov 0  }
  0x10   :  { %s1316_s24 = smov 0   ;;  %s1318_s25 = smov 0  }
  0x11   :  { %s1320_s26 = smov 0   ;;  %s1322_s27 = smov 0  }
  0x12   :  { %s1324_s28 = smov 0  }
  0x13 LB: > { %1746 = sst [smem:[#allocation18_spill]] %s1236_s21  ;;  %s1360_s29 = sadd.s32 4294967295, %s1264_s28   ;;  %s1264_s28 = sphi %s1324_s28, %s31_s28   ;;  %s1260_s27 = sphi %s1322_s27, %s1795_s27   ;;  %s1256_s26 = sphi %s1320_s26, %s1787_s26   ;;  %s1252_s25 = sphi %s1318_s25, %s1794_s25   ;;  %s1248_s24 = sphi %s1316_s24, %s1786_s24   ;;  %s1244_s23 = sphi %s1314_s23, %s1785_s23   ;;  %s1240_s22 = sphi %s1312_s22, %s1793_s22   ;;  %s1236_s21 = sphi %s1310_s21, %s1792_s21   ;;  %s1232_s20 = sphi %s1308_s20, %s1791_s20   ;;  %s1228_s19 = sphi %s1306_s19, %s1790_s19   ;;  %s1224_s18 = sphi %s1304_s18, %s1789_s18  }
  0x14   : > { %1747 = sst [smem:[#allocation19_spill]] %s1244_s23  ;;  %s808_s30 = sadd.s32 4294967294, %s1264_s28  }
  0x15   : > { %1748 = sst [smem:[#allocation20_spill]] %s1248_s24  ;;  %s46_s6 = sadd.s32 1, %s1256_s26 }
  0x16   : > { %1749 = sst [smem:[#allocation21_spill]] %s1256_s26  ;;  %s50_s7 = sadd.s32 1, %s1260_s27 }
  0x17   : > { %p48_p0 = scmp.ge.s32.totalorder %s46_s6, 2  ;;  %s61_s8 = sadd.s32 1, %s1244_s23 }
  0x18   : > { %p68_p1 = scmp.ne.s32.totalorder %s1244_s23, %s1240_s22  ;;  %p1735_p2 = scmp.eq.s32.totalorder %s1264_s28, 0 }
  0x19   : > { %s1797_s6 = smov (%p48_p0, %s46_s6), 0  ;;  %s1799_s7 = smov (!%p48_p0, %s50_s7), %s1260_s27 }
  0x1a   : > { %1750 = sst [smem:[#allocation22_spill]] %s1797_s6  ;;  %s55_s9 = ssub.s32 %s1256_s26, %s1797_s6 }
  0x1b   : > { %p1376_p3 = por %p1735_p2, %p68_p1  ;;  %p52_p4 = scmp.ge.s32.totalorder %s1799_s7, 2 }
  0x1c   : > { %p74_p5 = scmp.ne.s32.totalorder %s1240_s22, %s1236_s21  ;;  %p1734_p6 = scmp.eq.s32.totalorder %s1360_s29, 0 }
  0x1d   : > { %p186_p7 = scmp.eq.s32.totalorder %s1360_s29, 3  ;;  %s1801_s7 = smov (%p52_p4, %s1799_s7), 0 }
  0x1e   : > { %1752 = sst [smem:[#allocation23_spill]] %s1801_s7  ;;  %p1388_p8 = por %p1734_p6, %p74_p5 }
  0x1f   : > { %p1392_p9 = por %p186_p7, %p68_p1  ;;  %s1398_s13 = ssub.s32 %s1260_s27, %s1801_s7 }
  0x20   : > { %s1753_s11 = scalar_select %p1388_p8, 1, 0 }
  0x21   : > { %s1754_s12 = scalar_select %p1392_p9, 1, 0 }
  0x22   : > { %p192_p10 = scmp.eq.s32.totalorder %s808_s30, 3  ;;  %s56_s14 = sor.u32 %s55_s9, %s1398_s13 }
  0x23   : > { %1755 = sst [smem:[#allocation24_spill]] %s1754_s12  ;;  %p59_p12 = scmp.eq.s32.totalorder %s56_s14, 0 }
  0x24   : > { %p1402_p13 = por %p192_p10, %p74_p5  ;;  %p1733_p0 = scmp.lt.s32.totalorder %s1264_s28, 4 }
  0x25   : > { %s1408_s16 = scalar_select %p59_p12, %s1244_s23, %s61_s8  }
  0x26   : > { %s1756_s15 = scalar_select %p1402_p13, 1, 0 }
  0x27   : > { %1758 = sst [smem:[#allocation26_spill]] %s1408_s16  ;;  %s1729_s17 = sand.u32 1, %s1244_s23  }
  0x28   : > { %1757 = sst [smem:[#allocation25_spill]] %s1756_s15  ;;  %s812_s6 = sshll.u32 %s1260_s27, 1 }
  0x29   : > { %s1414_s21 = sshll.u32 %s1729_s17, 3  ;;  %s252_s7 = sadd.s32 %s1256_s26, %s812_s6 }
  0x2a   : > { %s1417_s4 = sshll.u32 %s252_s7, 7  ;;  %p1423_p1 = pnand %p1733_p0, %p1376_p3 }
  0x2b   : > { %s263_s9 = sand.u32 1, %s1264_s28   ;;  %s1760_s1 = sld [smem:[#allocation27_spill]] }
  0x2c   : > { %s1759_s30 = scalar_select %p1423_p1, 1, 0 }
  0x2d   : > { %s267_s6 = scalar_lea.vmem [#allocation5], %s1414_s21  ;;  %s1438_s10 = scalar_lea.sflag [#allocation6], %s263_s9 }
  0x2e   : > { %s276_s7 = sshll.u32 %s267_s6, 4  ;;  %p1444_p5 = pneg %p1423_p1  ;;  %s1435_s7 = int_to_ptr.vmem [resolvable:$true] %s276_s7 }
  0x31   : > { %s1432_s16 = scalar_lea.hbm %s1760_s1, %s1417_s4  ;;  %s987_s6 = scalar_lea.hbm %s1760_s1, 512 }
  0x32   : > { %s982_s17 = scalar_lea.hbm %s1432_s16, 128  ;;  %p988_p12 = scmp.lt.u32.totalorder %s1432_s16, %s1760_s1 }
  0x33   : > { %p983_p3 = scmp.ne.s32.totalorder %s1432_s16, %s982_s17  ;;  %p989_p0 = scmp.lt.u32.totalorder %s987_s6, %s982_s17 }
  0x34   : > { %p991_p2 = scmp.lt.u32.totalorder %s982_s17, %s1432_s16 }
  0x35   : > { %p985_p7 = pnand %p1444_p5, %p983_p3  ;;  %p990_p6 = por %p989_p0, %p988_p12 }
  0x37   : > { %p986_p10 = pneg %p985_p7  ;;  %p992_p11 = por %p991_p2, %p990_p6 }
  0x39   : > { %p993_p4 = pnand %p992_p11, %p986_p10 }
  0x3b   : > { %996 = shalt.err (!%p993_p4)
}
  0x3c   : > { %s997_s9 = scalar_lea.vmem %s1435_s7, 128  ;;  %s1266_s8 = smov [#allocation5]  }
  0x3d   : > { %p998_p3 = scmp.ne.s32.totalorder %s1435_s7, %s997_s9  ;;  %s1002_s14 = sshll.u32 %s1266_s8, 4  ;;  %s1003_s14 = int_to_ptr.vmem [resolvable:$false] %s1002_s14 }
  0x3e   : > { %s1004_s5 = scalar_lea.vmem %s1003_s14, 256  ;;  %p1005_p9 = scmp.lt.s32.totalorder %s1435_s7, %s1003_s14 }
  0x3f   : > { %p1000_p7 = pnand %p998_p3, %p1444_p5  ;;  %p1006_p8 = scmp.lt.s32.totalorder %s1004_s5, %s997_s9 }
  0x41   : > { %p1001_p13 = pneg %p1000_p7  ;;  %p1007_p0 = por %p1006_p8, %p1005_p9 }
  0x43   : > { %p1008_p12 = pnand %p1007_p0, %p1001_p13 }
  0x45   : > { %1011 = shalt.err (!%p1008_p12)
}
  0x46   : > { %872 = dma.hbm_to_vmem [thread:$0]  (!%p1423_p1), %s1432_s16, 128, %s1435_s7, %s1438_s10  }
  0x47   : > { %p320_p2 = scmp.lt.s32.totalorder %s1264_s28, 5  ;;  %p1762_p6 = scmp.ge.s32.totalorder %s1264_s28, 1 }
  0x48   : > { %s1479_s9 = scalar_lea.hbm %s1719_s0, %s1417_s4  ;;  %s246_s8 = scalar_lea.vmem [#allocation2], %s1414_s21 }
  0x49   : > { %p1471_p11 = pnand %p1762_p6, %p320_p2  ;;  %s256_s14 = sshll.u32 %s246_s8, 4  ;;  %s257_s14 = int_to_ptr.vmem [resolvable:$true] %s256_s14 }
  0x4a   : > { %s1764_s5 = sand.u32 1, %s1244_s23   ;;  %s1012_s7 = scalar_lea.hbm %s1479_s9, 128 }
  0x4b   : > { %s1763_s15 = scalar_select %p1471_p11, 1, 0 }
  0x4c   : > { %s243_s16 = scalar_lea.sflag [#allocation3], %s1764_s5  ;;  %p1013_p8 = scmp.ne.s32.totalorder %s1479_s9, %s1012_s7 }
  0x4d   : > { %s1017_s17 = scalar_lea.hbm %s1719_s0, 512  ;;  %p1018_p4 = scmp.lt.u32.totalorder %s1479_s9, %s1719_s0 }
  0x4e   : > { %p1015_p9 = pnand %p1013_p8, %p1444_p5  ;;  %p1019_p10 = scmp.lt.u32.totalorder %s1017_s17, %s1012_s7 }
  0x4f   : > { %p1021_p7 = scmp.lt.u32.totalorder %s1012_s7, %s1479_s9 }
  0x50   : > { %p1016_p13 = pneg %p1015_p9  ;;  %p1020_p3 = por %p1019_p10, %p1018_p4 }
  0x52   : > { %p1022_p0 = por %p1021_p7, %p1020_p3 }
  0x54   : > { %p1023_p12 = pnand %p1022_p0, %p1016_p13 }
  0x56   : > { %1026 = shalt.err (!%p1023_p12)
}
  0x57   : > { %s1027_s8 = scalar_lea.vmem %s257_s14, 128  ;;  %s1267_s5 = smov [#allocation2]  }
  0x58   : > { %p1028_p2 = scmp.ne.s32.totalorder %s257_s14, %s1027_s8  ;;  %s1032_s23 = sshll.u32 %s1267_s5, 4  ;;  %s1033_s23 = int_to_ptr.vmem [resolvable:$false] %s1032_s23 }
  0x59   : > { %s1034_s1 = scalar_lea.vmem %s1033_s23, 256  ;;  %p1035_p9 = scmp.lt.s32.totalorder %s257_s14, %s1033_s23 }
  0x5a   : > { %p1030_p6 = pnand %p1028_p2, %p1444_p5  ;;  %p1036_p11 = scmp.lt.s32.totalorder %s1034_s1, %s1027_s8 }
  0x5c   : > { %p1031_p8 = pneg %p1030_p6  ;;  %p1037_p1 = por %p1036_p11, %p1035_p9 }
  0x5e   : > { %p1038_p4 = pnand %p1037_p1, %p1031_p8 }
  0x60   : > { %1041 = shalt.err (!%p1038_p4)
}
  0x61   : > { %p1765_p10 = scmp.ne.s32.totalorder %s1759_s30, 0  ;;  %s1505_s7 = scalar_lea.hbm %s1721_s2, %s1417_s4 }
  0x62   : > { %s287_s23 = scalar_lea.vmem [#allocation7], %s1414_s21  ;;  %s1042_s6 = scalar_lea.hbm %s1505_s7, 128 }
  0x63   : > { %869 = dma.hbm_to_vmem [thread:$0]  (!%p1765_p10), %s1479_s9, 128, %s257_s14, %s243_s16  }
  0x64   : > { %s296_s17 = sshll.u32 %s287_s23, 4  ;;  %p1043_p1 = scmp.ne.s32.totalorder %s1505_s7, %s1042_s6  ;;  %s297_s17 = int_to_ptr.vmem [resolvable:$true] %s296_s17 }
  0x65   : > { %s1047_s9 = scalar_lea.hbm %s1721_s2, 512  ;;  %p1048_p3 = scmp.lt.u32.totalorder %s1505_s7, %s1721_s2 }
  0x66   : > { %p1045_p11 = pnand %p1043_p1, %p1444_p5  ;;  %p1049_p7 = scmp.lt.u32.totalorder %s1047_s9, %s1042_s6 }
  0x67   : > { %p1051_p12 = scmp.lt.u32.totalorder %s1042_s6, %s1505_s7 }
  0x68   : > { %p1046_p13 = pneg %p1045_p11  ;;  %p1050_p0 = por %p1049_p7, %p1048_p3 }
  0x6a   : > { %p1052_p2 = por %p1051_p12, %p1050_p0 }
  0x6c   : > { %p1053_p6 = pnand %p1052_p2, %p1046_p13 }
  0x6e   : > { %1056 = shalt.err (!%p1053_p6)
}
  0x6f   : > { %s1057_s4 = scalar_lea.vmem %s297_s17, 128  ;;  %s1268_s21 = smov [#allocation7]  }
  0x70   : > { %p1058_p8 = scmp.ne.s32.totalorder %s297_s17, %s1057_s4  ;;  %s1062_s1 = sshll.u32 %s1268_s21, 4  ;;  %s1063_s1 = int_to_ptr.vmem [resolvable:$false] %s1062_s1 }
  0x71   : > { %s1064_s24 = scalar_lea.vmem %s1063_s1, 256  ;;  %p1065_p1 = scmp.lt.s32.totalorder %s297_s17, %s1063_s1 }
  0x72   : > { %p1060_p9 = pnand %p1058_p8, %p1444_p5  ;;  %p1066_p11 = scmp.lt.s32.totalorder %s1064_s24, %s1057_s4 }
  0x74   : > { %p1061_p4 = pneg %p1060_p9  ;;  %p1067_p10 = por %p1066_p11, %p1065_p1 }
  0x76   : > { %p1068_p3 = pnand %p1067_p10, %p1061_p4 }
  0x78   : > { %1071 = shalt.err (!%p1068_p3)
}
  0x79   : > { %p1766_p7 = scmp.ne.s32.totalorder %s1759_s30, 0  ;;  %s145_s26 = sadd.s32 1, %s1232_s20 }
  0x7a   : > { %p1767_p5 = scmp.eq.s32.totalorder %s1398_s13, 0  ;;  %p152_p10 = scmp.ne.s32.totalorder %s1232_s20, %s1228_s19 }
  0x7b   : > { %875 = dma.hbm_to_vmem [thread:$0]  (!%p1766_p7), %s1505_s7, 128, %s297_s17, %s1438_s10  }
  0x7c   : > { %s1530_s12 = scalar_select %p1767_p5, %s1232_s20, %s145_s26  }
  0x7d   : > { %p158_p13 = scmp.ne.s32.totalorder %s1228_s19, %s1224_s18  ;;  %s303_s30 = sand.u32 1, %s1232_s20  }
  0x7e   : > { %s821_s23 = sshll.u32 %s1260_s27, 7  ;;  %p1768_p0 = scmp.eq.s32.totalorder %s1264_s28, 0 }
  0x7f   : > { %p1769_p2 = scmp.eq.s32.totalorder %s1360_s29, 0  ;;  %s820_s8 = sshll.u32 %s303_s30, 3 }
  0x80   : > { %p154_p12 = por %p152_p10, %p1768_p0  ;;  %s1549_s10 = scalar_lea.hbm %s1722_s3, %s821_s23 }
  0x81   : > { %p1542_p6 = por %p158_p13, %p1769_p2  ;;  %s307_s18 = scalar_lea.vmem [#allocation8], %s820_s8 }
  0x82   : > { %s315_s13 = sshll.u32 %s307_s18, 4  ;;  %p1771_p8 = scmp.lt.s32.totalorder %s1264_s28, 4  ;;  %s1557_s13 = int_to_ptr.vmem [resolvable:$true] %s315_s13 }
  0x83   : > { %s304_s17 = scalar_lea.sflag [#allocation9], %s303_s30  ;;  %s1072_s14 = scalar_lea.hbm %s1549_s10, 128 }
  0x84   : > { %p1553_p9 = pnand %p1771_p8, %p154_p12  ;;  %p1073_p4 = scmp.ne.s32.totalorder %s1549_s10, %s1072_s14 }
  0x85   : > { %s1077_s21 = scalar_lea.hbm %s1722_s3, 256  ;;  %p1078_p7 = scmp.lt.u32.totalorder %s1549_s10, %s1722_s3 }
  0x86   : > { %p1074_p1 = pneg %p1553_p9  ;;  %p1079_p5 = scmp.lt.u32.totalorder %s1077_s21, %s1072_s14 }
  0x87   : > { %p1081_p13 = scmp.lt.u32.totalorder %s1072_s14, %s1549_s10 }
  0x88   : > { %p1075_p11 = pnand %p1074_p1, %p1073_p4  ;;  %p1080_p10 = por %p1079_p5, %p1078_p7 }
  0x8a   : > { %p1076_p3 = pneg %p1075_p11  ;;  %p1082_p0 = por %p1081_p13, %p1080_p10 }
  0x8c   : > { %p1083_p12 = pnand %p1082_p0, %p1076_p3 }
  0x8e   : > { %1086 = shalt.err (!%p1083_p12)
}
  0x8f   : > { %s1087_s26 = scalar_lea.vmem %s1557_s13, 128  ;;  %s1269_s30 = smov [#allocation8]  }
  0x90   : > { %p1088_p2 = scmp.ne.s32.totalorder %s1557_s13, %s1087_s26  ;;  %s1092_s23 = sshll.u32 %s1269_s30, 4  ;;  %s1093_s23 = int_to_ptr.vmem [resolvable:$false] %s1092_s23 }
  0x91   : > { %s1094_s8 = scalar_lea.vmem %s1093_s23, 256  ;;  %p1095_p11 = scmp.lt.s32.totalorder %s1557_s13, %s1093_s23 }
  0x92   : > { %p1090_p8 = pnand %p1088_p2, %p1074_p1  ;;  %p1096_p7 = scmp.lt.s32.totalorder %s1094_s8, %s1087_s26 }
  0x94   : > { %p1091_p4 = pneg %p1090_p8  ;;  %p1097_p5 = por %p1096_p7, %p1095_p11 }
  0x96   : > { %p1098_p10 = pnand %p1097_p5, %p1091_p4 }
  0x98   : > { %1101 = shalt.err (!%p1098_p10)
}
  0x99   : > { %878 = dma.hbm_to_vmem [thread:$0]  (!%p1553_p9), %s1549_s10, 128, %s1557_s13, %s304_s17  }
  0x9a   : > { %p1773_p3 = scmp.ne.s32.totalorder %s1763_s15, 0 }
  0x9b   : > { %s1587_s5 = sand.u32 (!%p1773_p3), 1, %s1240_s22   ;;  %p1774_p1 = scmp.ne.s32.totalorder (!%p1773_p3), %s1753_s11, 0 }
  0x9c   : > { %324 = sbr.rel (%p1773_p3) target bundleno = 931 (0x3a3), region = 36  ;;  %s1590_s9 = sshll.u32 (!%p1773_p3), %s1587_s5, 3 }
  0x9d   : > { %s327_s18 = scalar_lea.sflag (!%p1773_p3), [#allocation3], %s1587_s5  ;;  %s330_s14 = scalar_lea.vmem (!%p1773_p3), [#allocation2], %s1590_s9 }
  0xa3   : > { %1203 = dma.done.wait (%p1774_p1), %s327_s18, 128  }
  0xa4   : > { %1205 = vsyncadd (%p1774_p1), %s327_s18, 4294967168  ;;  %s335_s15 = sand.u32 1, %s1360_s29   ;;  %s339_s13 = scalar_lea.vmem [#allocation5], %s1590_s9 }
  0xa5   : > { %s336_s10 = scalar_lea.sflag [#allocation6], %s335_s15 }
  0xa6   : > { %1207 = dma.done.wait (%p1774_p1), %s336_s10, 256  }
  0xa7   : > { %1209 = vsyncadd (%p1774_p1), %s336_s10, 4294967040  ;;  %s353_s7 = sand.u32 1, %s1228_s19   ;;  %s348_s16 = scalar_lea.vmem [#allocation7], %s1590_s9 }
  0xa8   : > { %s826_s17 = sshll.u32 %s353_s7, 3  ;;  %s354_s4 = scalar_lea.sflag [#allocation9], %s353_s7 }
  0xa9   : > { %s357_s21 = scalar_lea.vmem [#allocation8], %s826_s17 }
  0xaa   : > { %1211 = dma.done.wait (%p1542_p6), %s354_s4, 128  }
  0xab   : > { %1213 = vsyncadd (%p1542_p6), %s354_s4, 4294967168  ;;  %v1270_v0 = vmov 0.0   ;;  %vm1271_vm0 = vmmov 0   ;;  %vm409_vm1 = vcmask 130048   ;;  %v406_v1 = vld [vmem:[%s339_s13] sm:$0xff]  ;;  %v404_v2 = vld [vmem:[%s330_s14] sm:$0xff] }
  0xac   : > { %844 = vmatprep.subr.mxu0 %v1270_v0  ;;  %846 = vmatprep.mubr.msk.f32.mxu0 %vm1271_vm0, %v1270_v0  ;;  %v405_v3 = vmul.f32 0.25, %v404_v2  ;;  %v408_v4 = vld [vmem:[%s357_s21] sm:$0xff]  ;;  %vm486_vm2 = vcmask 64512   ;;  %s1775_s29 = sld [smem:[#allocation20_spill]]  ;;  %v407_v14 = vld [vmem:[%s348_s16] sm:$0xff]  ;;  %s1776_s11 = sld [smem:[#allocation24_spill]] }
  0xad   : > { %849 = vmatprep.subr.mxu1 %v1270_v0  ;;  %851 = vmatprep.mubr.msk.f32.mxu1 %vm1271_vm0, %v1270_v0  ;;  %s403_s6 = scalar_lea.vmem [#allocation11], %s1590_s9  ;;  %s834_s1 = sshll.u32 %s1252_s25, 1 }
  0xae   : > { %845 = vmatpush3.xpose.msk.msra.mxu0 %vm409_vm1, %v406_v1  ;;  %850 = vmatpush3.msra.mxu1 %v407_v14  ;;  %s1777_s8 = sld [smem:[#allocation29_spill]]  ;;  %s611_s14 = sshll.u32 %s403_s6, 4  ;;  %s612_s14 = int_to_ptr.vmem [resolvable:$true] %s611_s14 }
  0xaf   : > { %s579_s15 = scalar_lea.sflag [#allocation12], %s1587_s5  ;;  %s1102_s10 = scalar_lea.vmem %s612_s14, 128 }
  0xb0   : > { %p1103_p6 = scmp.ne.s32.totalorder %s612_s14, %s1102_s10  ;;  %s1272_s25 = smov [#allocation11]  }
  0xb1   : > { %847 = vmatmul.mubr.msk.f32.vlgmr.msra.gmra.mrb[0].mxu0 %vm409_vm1, %v405_v3  ;;  %s1106_s13 = sshll.u32 %s1272_s25, 4  ;;  %s1107_s13 = int_to_ptr.vmem [resolvable:$false] %s1106_s13 }
  0xb2   : > { %s1621_s24 = sadd.s32 %s1775_s29, %s834_s1  ;;  %p1778_p9 = scmp.ne.s32.totalorder %s1776_s11, 0 }
  0xb3   : > { %s835_s26 = sshll.u32 %s1621_s24, 7  ;;  %s1108_s7 = scalar_lea.vmem %s1107_s13, 256 }
  0xb4   : > { %s1629_s18 = scalar_lea.hbm %s1777_s8, %s835_s26  ;;  %p1104_p13 = pnand %p1103_p6, %p1778_p9 }
  0xb5   : > { %p1109_p12 = scmp.lt.s32.totalorder %s612_s14, %s1107_s13  ;;  %p1110_p2 = scmp.lt.s32.totalorder %s1108_s7, %s1102_s10 }
  0xb6   : > { %p1105_p0 = pneg %p1104_p13 }
  0xb7   : > { %p1111_p8 = por %p1110_p2, %p1109_p12 }
  0xb9   : > { %p1112_p4 = pnand %p1111_p8, %p1105_p0 }
 0x184   : > { %v482_v5 = vpop.f32.mrb[0].mxu0 }
 0x185   : > { %v483_v6 = vadd.f32 %v482_v5, %v408_v4  ;;  %v848_v7 = vpop.f32.mrb[1].mxu0 }
 0x187   : > { %v487_v8 = vsel %vm486_vm2, %v483_v6, -inf }
 0x188   : > { %488 = vmax.xlane.f32.xlu0 %v487_v8 }
 0x215   : > { %v489_v9 = vpop.xlane.xlu0 %488 }
 0x216   : > { %v490_v10 = vsub.f32 %v483_v6, %v489_v9 }
 0x218   : > { %v491_v11 = vmul.f32 1.442695, %v490_v10 }
 0x21a   : > { %978 = vpow2.f32 %v491_v11 }
 0x224   : > { %v979_v12 = vpop.eup %978 }
 0x225   : > { %v493_v13 = vsel %vm486_vm2, %v979_v12, 0.0 }
 0x226   : > { %494 = vadd.xlane.f32.xlu0 %v493_v13 }
 0x2b3   : > { %v495_v15 = vpop.xlane.xlu0 %494 }
 0x2b4   : > { %980 = vrcp.f32 %v495_v15 }
 0x2be   : > { %v981_v16 = vpop.eup %980 }
 0x2bf   : > { %v497_v17 = vmul.f32 %v981_v16, %v979_v12 }
 0x2c1   : > { %852 = vmatmul.mubr.msk.f32.vlgmr.msra.gmra.mrb[0].mxu1 %vm486_vm2, %v497_v17  ;;  %571 = vst.msk [vmem:[%s403_s6] sm:$0xff] %vm486_vm2, %v497_v17 }
 0x2c2   : > { %1115 = shalt.err (!%p1112_p4)
}
 0x2c3   : > { %s1116_s17 = scalar_lea.hbm %s1629_s18, 128  ;;  %s1120_s21 = scalar_lea.hbm %s1777_s8, 512 }
 0x2c4   : > { %p1117_p11 = scmp.ne.s32.totalorder %s1629_s18, %s1116_s17  ;;  %p1121_p10 = scmp.lt.u32.totalorder %s1629_s18, %s1777_s8 }
 0x2c5   : > { %p1122_p3 = scmp.lt.u32.totalorder %s1120_s21, %s1116_s17  ;;  %p1124_p6 = scmp.lt.u32.totalorder %s1116_s17, %s1629_s18 }
 0x2c6   : > { %p1118_p7 = pnand %p1117_p11, %p1778_p9 }
 0x2c7   : > { %p1123_p1 = por %p1122_p3, %p1121_p10 }
 0x2c8   : > { %p1119_p5 = pneg %p1118_p7 }
 0x2c9   : > { %p1125_p13 = por %p1124_p6, %p1123_p1 }
 0x2cb   : > { %p1126_p0 = pnand %p1125_p13, %p1119_p5 }
 0x2cd   : > { %1129 = shalt.err (!%p1126_p0)
}
 0x2ce   : > { %863 = dma.vmem_to_hbm [thread:$0]  (%p1778_p9), %s612_s14, 128, %s1629_s18, %s579_s15  }
 0x2cf   : > { %s396_s1 = scalar_lea.vmem [#allocation10], %s1590_s9  ;;  %s1779_s25 = sld [smem:[#allocation28_spill]] }
 0x2d0   : > { %s595_s30 = sshll.u32 %s396_s1, 4  ;;  %s574_s17 = scalar_lea.sflag [#allocation4], %s1587_s5  ;;  %s1657_s30 = int_to_ptr.vmem [resolvable:$true] %s595_s30 }
 0x2d1   : > { %s1130_s16 = scalar_lea.vmem %s1657_s30, 128  ;;  %s1273_s9 = smov [#allocation10]  }
 0x2d2   : > { %p1131_p12 = scmp.ne.s32.totalorder %s1657_s30, %s1130_s16  ;;  %s1134_s24 = sshll.u32 %s1273_s9, 4  ;;  %s1135_s24 = int_to_ptr.vmem [resolvable:$false] %s1134_s24 }
 0x2d3   : > { %p1137_p4 = scmp.lt.s32.totalorder %s1657_s30, %s1135_s24 }
 0x2d4   : > { %p1132_p2 = pnand %p1131_p12, %p1778_p9 }
 0x2d5   : > { %s1780_s13 = smov %s1779_s25  ;;  %s1655_s7 = scalar_lea.hbm %s1779_s25, %s835_s26 }
 0x2d6   : > { %p1133_p8 = pneg %p1132_p2  ;;  %s1136_s26 = scalar_lea.vmem %s1135_s24, 256 }
 0x2d7   : > { %p1138_p11 = scmp.lt.s32.totalorder %s1136_s26, %s1130_s16 }
 0x2d9   : > { %p1139_p7 = por %p1138_p11, %p1137_p4 }
 0x2db   : > { %p1140_p5 = pnand %p1139_p7, %p1133_p8 }
 0x394   : > { %v567_v18 = vpop.f32.mrb[0].mxu1 }
 0x395   : > { %572 = vst.msk [vmem:[%s396_s1] sm:$0xff] %vm409_vm1, %v567_v18  ;;  %v853_v19 = vpop.f32.mrb[1].mxu1 }
 0x396   : > { %1143 = shalt.err (!%p1140_p5)
}
 0x397   : > { %s1144_s5 = scalar_lea.hbm %s1655_s7, 128  ;;  %s1148_s15 = scalar_lea.hbm %s1780_s13, 512 }
 0x398   : > { %p1145_p10 = scmp.ne.s32.totalorder %s1655_s7, %s1144_s5  ;;  %p1149_p6 = scmp.lt.u32.totalorder %s1655_s7, %s1780_s13 }
 0x399   : > { %p1150_p13 = scmp.lt.u32.totalorder %s1148_s15, %s1144_s5  ;;  %p1152_p12 = scmp.lt.u32.totalorder %s1144_s5, %s1655_s7 }
 0x39a   : > { %p1146_p3 = pnand %p1145_p10, %p1778_p9 }
 0x39b   : > { %p1151_p0 = por %p1150_p13, %p1149_p6 }
 0x39c   : > { %p1147_p1 = pneg %p1146_p3 }
 0x39d   : > { %p1153_p2 = por %p1152_p12, %p1151_p0 }
 0x39f   : > { %p1154_p8 = pnand %p1153_p2, %p1147_p1 }
 0x3a1   : > { %1157 = shalt.err (!%p1154_p8)
}
 0x3a2   : > { %862 = dma.vmem_to_hbm [thread:$0]  (%p1778_p9), %s1657_s30, 128, %s1655_s7, %s574_s17  }
 0x3a3 PF: > { %s1781_s29 = sld [smem:[#allocation18_spill]]  ;;  %s1782_s6 = sld [smem:[#allocation25_spill]] }
 0x3a4   : > { %p887_p4 = scmp.ge.s32.totalorder %s1264_s28, 2 }
 0x3a9   : > { %s623_s1 = sand.u32 1, %s1781_s29   ;;  %p1783_p11 = scmp.ne.s32.totalorder %s1782_s6, 0 }
 0x3aa   : > { %s624_s23 = scalar_lea.sflag [#allocation4], %s623_s1 }
 0x3ab   : > { %p880_p7 = pnand %p887_p4, %p1783_p11 }
 0x3ad   : > { %1215 = dma.done.wait (!%p880_p7), %s624_s23, 128  }
 0x3ae   : > { %1217 = vsyncadd (!%p880_p7), %s624_s23, 4294967168  ;;  %s633_s10 = scalar_lea.sflag [#allocation12], %s623_s1 }
 0x3af   : > { %1219 = dma.done.wait (!%p880_p7), %s633_s10, 128  }
 0x3b0   : > { %1221 = vsyncadd (!%p880_p7), %s633_s10, 4294967168  ;;  %s31_s28 = sadd.s32 1, %s1264_s28   ;;  %s1784_s11 = sld [smem:[#allocation19_spill]] }
 0x3b1   : > { %p28_p5 = scmp.ge.s32.totalorder %s31_s28, 6   ;;  %s1785_s23 = sld [smem:[#allocation26_spill]] }
 0x3b2   : > { %s1786_s24 = sld [smem:[#allocation21_spill]]  ;;  %s1787_s26 = sld [smem:[#allocation22_spill]] }
 0x3b3   : > { %s1788_s30 = sld [smem:[#allocation23_spill]]  ;;  %s1789_s18 = smov %s1228_s19 }
 0x3b4   : > { %s1790_s19 = smov %s1232_s20  ;;  %s1791_s20 = smov %s1530_s12 }
 0x3b5   : > { %s1792_s21 = smov %s1240_s22  ;;  %s1794_s25 = smov %s1260_s27 }
 0x3b6   : > { %s1793_s22 = smov %s1784_s11  ;;  %30 = sbr.rel (!%p28_p5) target bundleno = 19 (0x13), region = 135 }
 0x3b9   : > { %s1795_s27 = smov %s1788_s30 }
 0x3bd   :  { %638 = vsyncpa [#allocation3], 1 }
 0x3be   :  { %640 = vsyncpa [#allocation3 + $0x1], 1 }
 0x3bf   :  { %641 = vsyncpa [#allocation6], 1 }
 0x3c0   :  { %643 = vsyncpa [#allocation6 + $0x1], 1 }
 0x3c1   :  { %644 = vsyncpa [#allocation9], 1 }
 0x3c2   :  { %646 = vsyncpa [#allocation9 + $0x1], 1 }
 0x3c3   :  { %647 = vsyncpa [#allocation4], 1 }
 0x3c4   :  { %649 = vsyncpa [#allocation4 + $0x1], 1 }
 0x3c5   :  { %650 = vsyncpa [#allocation12], 1 }
 0x3c6   :  { %652 = vsyncpa [#allocation12 + $0x1], 1 }

</bundles_post_ra>
